<compile_context>
chip_gen: v6e
topology: v6e:2x2x1
jax: 0.10.0
libtpu: 0.0.40
codegen_flags: <defaults>
</compile_context>

<pallas_src>
import math
import functools

import jax
import jax.numpy as jnp
from jax import lax
from jax.experimental import pallas as pl
from jax.experimental.pallas import tpu as pltpu


def _mha_kernel(x_ref, wqkv_ref, bqkv_ref, wo_ref, bo_ref, o_ref, *,
                head_num: int, head_dim: int, hidden: int):
    cdt = x_ref.dtype                     # matmul/compute operand dtype (f32 or bf16)
    x = x_ref[0]                          # (S, H)

    # Fused Q/K/V projection: one wide, lane-dense MXU pass; f32 accumulation.
    qkv = jnp.dot(x, wqkv_ref[...], preferred_element_type=jnp.float32)
    qkv = (qkv + bqkv_ref[...]).astype(cdt)                    # (S, 3H)

    inv_sqrt_hd = 1.0 / math.sqrt(head_dim)
    outs = []
    for g in range(head_num):             # static (trace-time) unroll over heads
        lo = g * head_dim
        # Scale Q (S*head_dim mults) instead of the (S, S) score tile.
        q_h = qkv[:, lo:lo + head_dim] * inv_sqrt_hd
        k_h = qkv[:, hidden + lo:hidden + lo + head_dim]
        v_h = qkv[:, 2 * hidden + lo:2 * hidden + lo + head_dim]

        # Scores: contract the last dim of both operands (no K^T materialization).
        att = lax.dot_general(q_h, k_h, (((1,), (1,)), ((), ())),
                              preferred_element_type=jnp.float32)
        # TODO(synk): attention_mask (masked_fill) branch not wired in (mask=None path).

        # Numerically-stable softmax; exact reciprocal for f32 parity.
        att_max = jnp.max(att, axis=-1, keepdims=True)
        p = jnp.exp(att - att_max)
        denom = jnp.sum(p, axis=-1, keepdims=True)
        score = p * pl.reciprocal(denom, approx=False)
        # TODO(synk): Dropout on `score` treated as identity (eval-mode kernel).

        outs.append(jnp.dot(score.astype(cdt), v_h,
                            preferred_element_type=jnp.float32))     # (S, hd)

    # One full-width output projection (single contraction over H).
    out_mid = jnp.concatenate(outs, axis=-1).astype(cdt)             # (S, H)
    out = jnp.dot(out_mid, wo_ref[...], preferred_element_type=jnp.float32)
    o_ref[0] = (out + bo_ref[...]).astype(o_ref.dtype)


def _vmem_limit_bytes(S, H, mm_itemsize):
    """Generation-aware VMEM budget: enough for resident weights + pipelined
    x/out blocks + in-body intermediates, capped at 75% of per-core VMEM."""
    need = (2 * S * H * mm_itemsize          # x block, double-buffered
            + 2 * S * H * 4                  # out block (f32), double-buffered
            + 4 * H * H * mm_itemsize        # wqkv (H,3H) + wo (H,H), resident
            + 4 * H * 4                      # biases (f32), resident
            + 8 * S * max(3 * H, S) * 4)     # in-body intermediates headroom
    try:
        cap = pltpu.get_tpu_info().vmem_capacity_bytes
    except Exception:
        cap = 64 * 1024 * 1024               # conservative (v7x per-core VMEM)
    return int(min(max(2 * need, 32 * 1024 * 1024), int(0.75 * cap)))


def muti_attention_pallas(x, params, *, head_num: int, matmul_dtype=None):
    """x: (B, S, H).  params: (H, H) weights (y = x @ W + b layout), (1, H) biases.

    matmul_dtype: dtype for MXU operands (weights / x / score); f32 accumulation
    is kept via preferred_element_type. None -> x.dtype (exact f32 path)."""
    B, S, H = x.shape
    head_dim = H // head_num
    assert head_num * head_dim == H
    matmul_dtype = jnp.dtype(matmul_dtype if matmul_dtype is not None else x.dtype)

    # One-time host/XLA-side QKV fusion + (optional) bf16 cast of matmul operands.
    wqkv = jnp.concatenate([params["wq"], params["wk"], params["wv"]],
                           axis=-1).astype(matmul_dtype)              # (H, 3H)
    bqkv = jnp.concatenate([params["bq"], params["bk"], params["bv"]],
                           axis=-1).astype(jnp.float32)               # (1, 3H)
    wo = params["wo"].astype(matmul_dtype)                            # (H, H)
    bo = params["bo"].astype(jnp.float32)                             # (1, H)
    x_mm = x.astype(matmul_dtype)

    kernel = functools.partial(_mha_kernel, head_num=head_num,
                               head_dim=head_dim, hidden=H)

    # Weights/biases: constant index maps -> fetched once, resident across batch.
    x_spec = pl.BlockSpec((1, S, H), lambda b: (b, 0, 0))
    wqkv_spec = pl.BlockSpec((H, 3 * H), lambda b: (0, 0))
    bqkv_spec = pl.BlockSpec((1, 3 * H), lambda b: (0, 0))
    wo_spec = pl.BlockSpec((H, H), lambda b: (0, 0))
    bo_spec = pl.BlockSpec((1, H), lambda b: (0, 0))
    out_spec = pl.BlockSpec((1, S, H), lambda b: (b, 0, 0))

    flops = B * (8 * S * H * H + 4 * S * S * H)
    transcendentals = B * head_num * S * (S + 1)
    bytes_accessed = (B * S * H * (x_mm.dtype.itemsize + x.dtype.itemsize)
                      + 4 * H * H * matmul_dtype.itemsize             # weights, once
                      + 4 * H * 4)                                    # biases, once

    return pl.pallas_call(
        kernel,
        out_shape=jax.ShapeDtypeStruct((B, S, H), x.dtype),
        grid_spec=pltpu.PrefetchScalarGridSpec(
            num_scalar_prefetch=0,
            grid=(B,),
            in_specs=[x_spec, wqkv_spec, bqkv_spec, wo_spec, bo_spec],
            out_specs=out_spec,
        ),
        compiler_params=pltpu.CompilerParams(
            dimension_semantics=("parallel",),   # v7x: batch shards across 2 TCs
            vmem_limit_bytes=_vmem_limit_bytes(S, H, matmul_dtype.itemsize),
        ),
        cost_estimate=pl.CostEstimate(
            flops=flops,
            transcendentals=transcendentals,
            bytes_accessed=bytes_accessed),
    )(x_mm, wqkv, bqkv, wo, bo)


def _reference(x, params, *, head_num: int):
    """Plain-JAX reference replicating the PyTorch forward (dropout = identity)."""
    B, S, H = x.shape
    hd = H // head_num
    q = x @ params["wq"] + params["bq"][0]
    k = x @ params["wk"] + params["bk"][0]
    v = x @ params["wv"] + params["bv"][0]

    def split(t):  # (B, S, H) -> (B, heads, S, hd)
        return t.reshape(B, S, head_num, hd).transpose(0, 2, 1, 3)

    qs, ks, vs = split(q), split(k), split(v)
    att = jnp.einsum("bhqd,bhkd->bhqk", qs, ks) / math.sqrt(hd)
    score = jax.nn.softmax(att, axis=-1)
    out_mid = jnp.einsum("bhqk,bhkd->bhqd", score, vs)
    out_mid = out_mid.transpose(0, 2, 1, 3).reshape(B, S, H)
    return out_mid @ params["wo"] + params["bo"][0]


if __name__ == "__main__":
    # Small shapes consistent with the module: batch=2, seq=8, hidden=32, heads=4.
    B, S, H = 2, 8, 32
    HEAD_NUM = 4

    key = jax.random.PRNGKey(0)
    keys = jax.random.split(key, 9)
    scale = 1.0 / math.sqrt(H)

    x = jax.random.normal(keys[0], (B, S, H), dtype=jnp.float32)
    params = {
        "wq": jax.random.normal(keys[1], (H, H), jnp.float32) * scale,
        "bq": jax.random.normal(keys[2], (1, H), jnp.float32) * 0.01,
        "wk": jax.random.normal(keys[3], (H, H), jnp.float32) * scale,
        "bk": jax.random.normal(keys[4], (1, H), jnp.float32) * 0.01,
        "wv": jax.random.normal(keys[5], (H, H), jnp.float32) * scale,
        "bv": jax.random.normal(keys[6], (1, H), jnp.float32) * 0.01,
        "wo": jax.random.normal(keys[7], (H, H), jnp.float32) * scale,
        "bo": jax.random.normal(keys[8], (1, H), jnp.float32) * 0.01,
    }

    ref = _reference(x, params, head_num=HEAD_NUM)

    # Exact (f32 operand) path: should match the PyTorch-equivalent reference tightly.
    out = jax.block_until_ready(muti_attention_pallas(x, params, head_num=HEAD_NUM))
    assert out.shape == (B, S, H)
    assert jnp.allclose(out, ref, atol=1e-4, rtol=1e-4), "f32 path mismatch vs reference"

    # bf16 MXU-operand path (perf mode): f32 accumulation, looser tolerance from rounding.
    out_bf16 = jax.block_until_ready(
        muti_attention_pallas(x, params, head_num=HEAD_NUM, matmul_dtype=jnp.bfloat16))
    assert jnp.allclose(out_bf16, ref, atol=5e-2, rtol=5e-2), "bf16 path mismatch vs reference"

    print("KERNEL_OK")
</pallas_src>

<mosaic_0001>
module attributes {stable_mosaic.version = 11 : i64} {
  func.func @_mha_kernel(%arg0: i32, %arg1: memref<1x8x32xf32, #tpu.memory_space<vmem>>, %arg2: memref<32x96xf32, #tpu.memory_space<vmem>>, %arg3: memref<1x96xf32, #tpu.memory_space<vmem>>, %arg4: memref<32x32xf32, #tpu.memory_space<vmem>>, %arg5: memref<1x32xf32, #tpu.memory_space<vmem>>, %arg6: memref<1x8x32xf32, #tpu.memory_space<vmem>>) attributes {dimension_semantics = [#tpu.dimension_semantics<parallel>], iteration_bounds = array<i64: 2>, scalar_prefetch = 0 : i64, scratch_operands = 0 : i64, tpu.core_type = #tpu.core_type<tc>, window_params = [{transform_indices = @transform_0, window_bounds = array<i64: 1, 8, 32>}, {pipeline_mode = #tpu.pipeline_mode<synchronous>, transform_indices = @transform_1, window_bounds = array<i64: 32, 96>}, {pipeline_mode = #tpu.pipeline_mode<synchronous>, transform_indices = @transform_2, window_bounds = array<i64: 1, 96>}, {pipeline_mode = #tpu.pipeline_mode<synchronous>, transform_indices = @transform_3, window_bounds = array<i64: 32, 32>}, {pipeline_mode = #tpu.pipeline_mode<synchronous>, transform_indices = @transform_4, window_bounds = array<i64: 1, 32>}, {transform_indices = @transform_5, window_bounds = array<i64: 1, 8, 32>}]} {
    %c0 = arith.constant 0 : index
    %c0_0 = arith.constant 0 : index
    %c0_1 = arith.constant 0 : index
    %0 = vector.load %arg1[%c0, %c0_0, %c0_1] : memref<1x8x32xf32, #tpu.memory_space<vmem>>, vector<1x8x32xf32>
    %1 = vector.shape_cast %0 : vector<1x8x32xf32> to vector<8x32xf32>
    %c0_2 = arith.constant 0 : index
    %c0_3 = arith.constant 0 : index
    %2 = vector.load %arg2[%c0_2, %c0_3] : memref<32x96xf32, #tpu.memory_space<vmem>>, vector<32x96xf32>
    %cst = arith.constant dense<0.000000e+00> : vector<8x96xf32>
    %3 = tpu.matmul %1, %2, %cst {dimension_numbers = #tpu.dot_dimension_numbers<[1], [0], [0], [1], [0, 0, 1, 1], [], []>} : vector<8x32xf32>, vector<32x96xf32>, vector<8x96xf32> -> vector<8x96xf32>
    %c0_4 = arith.constant 0 : index
    %c0_5 = arith.constant 0 : index
    %4 = vector.load %arg3[%c0_4, %c0_5] : memref<1x96xf32, #tpu.memory_space<vmem>>, vector<1x96xf32>
    %5 = vector.broadcast %4 : vector<1x96xf32> to vector<8x96xf32>
    %6 = arith.addf %3, %5 : vector<8x96xf32>
    %7 = vector.extract_strided_slice %6 {offsets = [0, 0], sizes = [8, 8], strides = [1, 1]} : vector<8x96xf32> to vector<8x8xf32>
    %cst_6 = arith.constant 0.353553385 : f32
    %8 = vector.broadcast %cst_6 : f32 to vector<8x8xf32>
    %9 = arith.mulf %7, %8 : vector<8x8xf32>
    %10 = vector.extract_strided_slice %6 {offsets = [0, 32], sizes = [8, 8], strides = [1, 1]} : vector<8x96xf32> to vector<8x8xf32>
    %11 = vector.extract_strided_slice %6 {offsets = [0, 64], sizes = [8, 8], strides = [1, 1]} : vector<8x96xf32> to vector<8x8xf32>
    %cst_7 = arith.constant dense<0.000000e+00> : vector<8x8xf32>
    %12 = tpu.matmul %9, %10, %cst_7 {dimension_numbers = #tpu.dot_dimension_numbers<[1], [1], [0], [0], [0, 0, 1, 0], [], []>} : vector<8x8xf32>, vector<8x8xf32>, vector<8x8xf32> -> vector<8x8xf32>
    %cst_8 = arith.constant dense<0xFF800000> : vector<8xf32>
    %13 = vector.multi_reduction <maximumf>, %12, %cst_8 [1] : vector<8x8xf32> to vector<8xf32>
    %14 = vector.shape_cast %13 : vector<8xf32> to vector<8x1xf32>
    %15 = vector.broadcast %14 : vector<8x1xf32> to vector<8x8xf32>
    %16 = arith.subf %12, %15 : vector<8x8xf32>
    %17 = math.exp %16 : vector<8x8xf32>
    %cst_9 = arith.constant dense<0.000000e+00> : vector<8xf32>
    %18 = vector.multi_reduction <add>, %17, %cst_9 [1] : vector<8x8xf32> to vector<8xf32>
    %19 = vector.shape_cast %18 : vector<8xf32> to vector<8x1xf32>
    %20 = tpu.reciprocal %19 : vector<8x1xf32> -> vector<8x1xf32>
    %21 = vector.broadcast %20 : vector<8x1xf32> to vector<8x8xf32>
    %22 = arith.mulf %17, %21 : vector<8x8xf32>
    %cst_10 = arith.constant dense<0.000000e+00> : vector<8x8xf32>
    %23 = tpu.matmul %22, %11, %cst_10 {dimension_numbers = #tpu.dot_dimension_numbers<[1], [0], [0], [1], [0, 0, 1, 1], [], []>} : vector<8x8xf32>, vector<8x8xf32>, vector<8x8xf32> -> vector<8x8xf32>
    %24 = vector.extract_strided_slice %6 {offsets = [0, 8], sizes = [8, 8], strides = [1, 1]} : vector<8x96xf32> to vector<8x8xf32>
    %cst_11 = arith.constant 0.353553385 : f32
    %25 = vector.broadcast %cst_11 : f32 to vector<8x8xf32>
    %26 = arith.mulf %24, %25 : vector<8x8xf32>
    %27 = vector.extract_strided_slice %6 {offsets = [0, 40], sizes = [8, 8], strides = [1, 1]} : vector<8x96xf32> to vector<8x8xf32>
    %28 = vector.extract_strided_slice %6 {offsets = [0, 72], sizes = [8, 8], strides = [1, 1]} : vector<8x96xf32> to vector<8x8xf32>
    %cst_12 = arith.constant dense<0.000000e+00> : vector<8x8xf32>
    %29 = tpu.matmul %26, %27, %cst_12 {dimension_numbers = #tpu.dot_dimension_numbers<[1], [1], [0], [0], [0, 0, 1, 0], [], []>} : vector<8x8xf32>, vector<8x8xf32>, vector<8x8xf32> -> vector<8x8xf32>
    %cst_13 = arith.constant dense<0xFF800000> : vector<8xf32>
    %30 = vector.multi_reduction <maximumf>, %29, %cst_13 [1] : vector<8x8xf32> to vector<8xf32>
    %31 = vector.shape_cast %30 : vector<8xf32> to vector<8x1xf32>
    %32 = vector.broadcast %31 : vector<8x1xf32> to vector<8x8xf32>
    %33 = arith.subf %29, %32 : vector<8x8xf32>
    %34 = math.exp %33 : vector<8x8xf32>
    %cst_14 = arith.constant dense<0.000000e+00> : vector<8xf32>
    %35 = vector.multi_reduction <add>, %34, %cst_14 [1] : vector<8x8xf32> to vector<8xf32>
    %36 = vector.shape_cast %35 : vector<8xf32> to vector<8x1xf32>
    %37 = tpu.reciprocal %36 : vector<8x1xf32> -> vector<8x1xf32>
    %38 = vector.broadcast %37 : vector<8x1xf32> to vector<8x8xf32>
    %39 = arith.mulf %34, %38 : vector<8x8xf32>
    %cst_15 = arith.constant dense<0.000000e+00> : vector<8x8xf32>
    %40 = tpu.matmul %39, %28, %cst_15 {dimension_numbers = #tpu.dot_dimension_numbers<[1], [0], [0], [1], [0, 0, 1, 1], [], []>} : vector<8x8xf32>, vector<8x8xf32>, vector<8x8xf32> -> vector<8x8xf32>
    %41 = vector.extract_strided_slice %6 {offsets = [0, 16], sizes = [8, 8], strides = [1, 1]} : vector<8x96xf32> to vector<8x8xf32>
    %cst_16 = arith.constant 0.353553385 : f32
    %42 = vector.broadcast %cst_16 : f32 to vector<8x8xf32>
    %43 = arith.mulf %41, %42 : vector<8x8xf32>
    %44 = vector.extract_strided_slice %6 {offsets = [0, 48], sizes = [8, 8], strides = [1, 1]} : vector<8x96xf32> to vector<8x8xf32>
    %45 = vector.extract_strided_slice %6 {offsets = [0, 80], sizes = [8, 8], strides = [1, 1]} : vector<8x96xf32> to vector<8x8xf32>
    %cst_17 = arith.constant dense<0.000000e+00> : vector<8x8xf32>
    %46 = tpu.matmul %43, %44, %cst_17 {dimension_numbers = #tpu.dot_dimension_numbers<[1], [1], [0], [0], [0, 0, 1, 0], [], []>} : vector<8x8xf32>, vector<8x8xf32>, vector<8x8xf32> -> vector<8x8xf32>
    %cst_18 = arith.constant dense<0xFF800000> : vector<8xf32>
    %47 = vector.multi_reduction <maximumf>, %46, %cst_18 [1] : vector<8x8xf32> to vector<8xf32>
    %48 = vector.shape_cast %47 : vector<8xf32> to vector<8x1xf32>
    %49 = vector.broadcast %48 : vector<8x1xf32> to vector<8x8xf32>
    %50 = arith.subf %46, %49 : vector<8x8xf32>
    %51 = math.exp %50 : vector<8x8xf32>
    %cst_19 = arith.constant dense<0.000000e+00> : vector<8xf32>
    %52 = vector.multi_reduction <add>, %51, %cst_19 [1] : vector<8x8xf32> to vector<8xf32>
    %53 = vector.shape_cast %52 : vector<8xf32> to vector<8x1xf32>
    %54 = tpu.reciprocal %53 : vector<8x1xf32> -> vector<8x1xf32>
    %55 = vector.broadcast %54 : vector<8x1xf32> to vector<8x8xf32>
    %56 = arith.mulf %51, %55 : vector<8x8xf32>
    %cst_20 = arith.constant dense<0.000000e+00> : vector<8x8xf32>
    %57 = tpu.matmul %56, %45, %cst_20 {dimension_numbers = #tpu.dot_dimension_numbers<[1], [0], [0], [1], [0, 0, 1, 1], [], []>} : vector<8x8xf32>, vector<8x8xf32>, vector<8x8xf32> -> vector<8x8xf32>
    %58 = vector.extract_strided_slice %6 {offsets = [0, 24], sizes = [8, 8], strides = [1, 1]} : vector<8x96xf32> to vector<8x8xf32>
    %cst_21 = arith.constant 0.353553385 : f32
    %59 = vector.broadcast %cst_21 : f32 to vector<8x8xf32>
    %60 = arith.mulf %58, %59 : vector<8x8xf32>
    %61 = vector.extract_strided_slice %6 {offsets = [0, 56], sizes = [8, 8], strides = [1, 1]} : vector<8x96xf32> to vector<8x8xf32>
    %62 = vector.extract_strided_slice %6 {offsets = [0, 88], sizes = [8, 8], strides = [1, 1]} : vector<8x96xf32> to vector<8x8xf32>
    %cst_22 = arith.constant dense<0.000000e+00> : vector<8x8xf32>
    %63 = tpu.matmul %60, %61, %cst_22 {dimension_numbers = #tpu.dot_dimension_numbers<[1], [1], [0], [0], [0, 0, 1, 0], [], []>} : vector<8x8xf32>, vector<8x8xf32>, vector<8x8xf32> -> vector<8x8xf32>
    %cst_23 = arith.constant dense<0xFF800000> : vector<8xf32>
    %64 = vector.multi_reduction <maximumf>, %63, %cst_23 [1] : vector<8x8xf32> to vector<8xf32>
    %65 = vector.shape_cast %64 : vector<8xf32> to vector<8x1xf32>
    %66 = vector.broadcast %65 : vector<8x1xf32> to vector<8x8xf32>
    %67 = arith.subf %63, %66 : vector<8x8xf32>
    %68 = math.exp %67 : vector<8x8xf32>
    %cst_24 = arith.constant dense<0.000000e+00> : vector<8xf32>
    %69 = vector.multi_reduction <add>, %68, %cst_24 [1] : vector<8x8xf32> to vector<8xf32>
    %70 = vector.shape_cast %69 : vector<8xf32> to vector<8x1xf32>
    %71 = tpu.reciprocal %70 : vector<8x1xf32> -> vector<8x1xf32>
    %72 = vector.broadcast %71 : vector<8x1xf32> to vector<8x8xf32>
    %73 = arith.mulf %68, %72 : vector<8x8xf32>
    %cst_25 = arith.constant dense<0.000000e+00> : vector<8x8xf32>
    %74 = tpu.matmul %73, %62, %cst_25 {dimension_numbers = #tpu.dot_dimension_numbers<[1], [0], [0], [1], [0, 0, 1, 1], [], []>} : vector<8x8xf32>, vector<8x8xf32>, vector<8x8xf32> -> vector<8x8xf32>
    %75 = tpu.concatenate %23, %40, %57, %74 in 1 : vector<8x8xf32>, vector<8x8xf32>, vector<8x8xf32>, vector<8x8xf32> -> vector<8x32xf32>
    %c0_26 = arith.constant 0 : index
    %c0_27 = arith.constant 0 : index
    %76 = vector.load %arg4[%c0_26, %c0_27] : memref<32x32xf32, #tpu.memory_space<vmem>>, vector<32x32xf32>
    %cst_28 = arith.constant dense<0.000000e+00> : vector<8x32xf32>
    %77 = tpu.matmul %75, %76, %cst_28 {dimension_numbers = #tpu.dot_dimension_numbers<[1], [0], [0], [1], [0, 0, 1, 1], [], []>} : vector<8x32xf32>, vector<32x32xf32>, vector<8x32xf32> -> vector<8x32xf32>
    %c0_29 = arith.constant 0 : index
    %c0_30 = arith.constant 0 : index
    %78 = vector.load %arg5[%c0_29, %c0_30] : memref<1x32xf32, #tpu.memory_space<vmem>>, vector<1x32xf32>
    %79 = vector.broadcast %78 : vector<1x32xf32> to vector<8x32xf32>
    %80 = arith.addf %77, %79 : vector<8x32xf32>
    %c0_31 = arith.constant 0 : index
    %c0_32 = arith.constant 0 : index
    %c0_33 = arith.constant 0 : index
    %81 = vector.load %arg6[%c0_31, %c0_32, %c0_33] : memref<1x8x32xf32, #tpu.memory_space<vmem>>, vector<1x8x32xf32>
    %82 = vector.shape_cast %81 : vector<1x8x32xf32> to vector<8x32xf32>
    %83 = vector.shape_cast %80 : vector<8x32xf32> to vector<1x8x32xf32>
    tpu.vector_store %arg6[%c0_31, %c0_32, %c0_33], %83 {strides = array<i32>} : memref<1x8x32xf32, #tpu.memory_space<vmem>>, vector<1x8x32xf32>,
    return
  }
  func.func @transform_0(%arg0: i32) -> (i32, i32, i32) {
    %c0_i32 = arith.constant 0 : i32
    %c0_i32_0 = arith.constant 0 : i32
    %c0_i32_1 = arith.constant 0 : i32
    return %arg0, %c0_i32, %c0_i32_0 : i32, i32, i32
  }
  func.func @transform_1(%arg0: i32) -> (i32, i32) {
    %c0_i32 = arith.constant 0 : i32
    %c0_i32_0 = arith.constant 0 : i32
    %c0_i32_1 = arith.constant 0 : i32
    return %c0_i32, %c0_i32_0 : i32, i32
  }
  func.func @transform_2(%arg0: i32) -> (i32, i32) {
    %c0_i32 = arith.constant 0 : i32
    %c0_i32_0 = arith.constant 0 : i32
    %c0_i32_1 = arith.constant 0 : i32
    return %c0_i32, %c0_i32_0 : i32, i32
  }
  func.func @transform_3(%arg0: i32) -> (i32, i32) {
    %c0_i32 = arith.constant 0 : i32
    %c0_i32_0 = arith.constant 0 : i32
    %c0_i32_1 = arith.constant 0 : i32
    return %c0_i32, %c0_i32_0 : i32, i32
  }
  func.func @transform_4(%arg0: i32) -> (i32, i32) {
    %c0_i32 = arith.constant 0 : i32
    %c0_i32_0 = arith.constant 0 : i32
    %c0_i32_1 = arith.constant 0 : i32
    return %c0_i32, %c0_i32_0 : i32, i32
  }
  func.func @transform_5(%arg0: i32) -> (i32, i32, i32) {
    %c0_i32 = arith.constant 0 : i32
    %c0_i32_0 = arith.constant 0 : i32
    %c0_i32_1 = arith.constant 0 : i32
    return %arg0, %c0_i32, %c0_i32_0 : i32, i32, i32
  }
}

</mosaic_0001>

<bundles_post_ra>
// kernel: tpu_custom_call.1
= control target key start
LH: loop header
LB: loop body
LE: loop exit
PB: predicated region body
PF: predicated region fallthrough
CT: control target
= control target key end

     0   :  { %10 = vsyncpa [#allocation3], 0  ;;  %s1900_s0 = inlined_call_operand.hbm [shape: f32[2,8,32], index: 0, kind: input, shape index: {}]   ;;  %s1901_s1 = inlined_call_operand.hbm [shape: f32[32,96], index: 1, kind: input, shape index: {}]   ;;  %s1902_s2 = inlined_call_operand.vmem [shape: f32[1,96], index: 2, kind: input, shape index: {}]   ;;  %s1903_s3 = inlined_call_operand.hbm [shape: f32[32,32], index: 3, kind: input, shape index: {}]   ;;  %s1904_s4 = inlined_call_operand.vmem [shape: f32[1,32], index: 4, kind: input, shape index: {}]   ;;  %s1905_s5 = inlined_call_operand.hbm [shape: f32[2,8,32], index: 5, kind: output, shape index: {}]  }
   0x1   :  { %12 = vsyncpa [#allocation3 + $0x1], 0 }
   0x2   :  { %13 = vsyncpa [#allocation6], 0 }
   0x3   :  { %14 = vsyncpa [#allocation4], 0 }
   0x4   :  { %16 = vsyncpa [#allocation4 + $0x1], 0  ;;  %s1645_s18 = smov 0   ;;  %s1647_s19 = smov 0  }
   0x5   :  { %s1649_s20 = smov 0   ;;  %s1651_s21 = smov 0  }
   0x6 LB: > { %s1666_s22 = sadd.s32 4294967295, %s1591_s21   ;;  %s1222_s23 = sadd.s32 4294967294, %s1591_s21   ;;  %s1591_s21 = sphi %s1651_s21, %s1927_s21   ;;  %s1587_s20 = sphi %s1649_s20, %s1926_s20   ;;  %s1583_s19 = sphi %s1647_s19, %s1925_s19   ;;  %s1579_s18 = sphi %s1645_s18, %s1924_s18  }
   0x7   : > { %p42_p0 = scmp.ne.s32.totalorder %s1583_s19, %s1579_s18  ;;  %p1906_p1 = scmp.eq.s32.totalorder %s1666_s22, 0 }
   0x8   : > { %p156_p3 = scmp.eq.s32.totalorder %s1222_s23, 1  ;;  %p1223_p5 = scmp.ge.s32.totalorder %s1591_s21, 1 }
   0x9   : > { %p1675_p4 = por %p1906_p1, %p42_p0  ;;  %p163_p7 = scmp.lt.s32.totalorder %s1591_s21, 3 }
   0xa   : > { %p1680_p6 = por %p156_p3, %p42_p0  ;;  %s1593_s27 = smov [#allocation5]  }
   0xb   : > { %s1910_s24 = scalar_select %p1675_p4, 1, 0 }
   0xc   : > { %s1911_s25 = scalar_select %p1680_p6, 1, 0 }
   0xd   : > { %p1685_p8 = pnand %p1223_p5, %p163_p7  ;;  %s175_s28 = sshll.u32 %s1593_s27, 4  ;;  %s176_s28 = int_to_ptr.vmem [resolvable:$true] %s175_s28 }
   0xe   : > { %s1594_s30 = smov [#allocation7]   ;;  %s1454_s7 = scalar_lea.vmem %s176_s28, 512 }
   0xf   : > { %s1912_s26 = scalar_select %p1685_p8, 1, 0 }
  0x10   : > { %p1354_p9 = pneg %p1685_p8  ;;  %s191_s6 = sshll.u32 %s1594_s30, 4  ;;  %s192_s6 = int_to_ptr.vmem [resolvable:$true] %s191_s6 }
  0x11   : > { %p1455_p13 = scmp.ne.s32.totalorder %s176_s28, %s1454_s7  ;;  %p1462_p5 = scmp.lt.s32.totalorder %s176_s28, %s176_s28 }
  0x12   : > { %p1694_p11 = pnand %p1354_p9, %p1906_p1  ;;  %p1463_p7 = scmp.lt.s32.totalorder %s1454_s7, %s1454_s7 }
  0x14   : > { %p1445_p12 = pneg %p1694_p11  ;;  %p1464_p10 = por %p1463_p7, %p1462_p5 }
  0x16   : > { %p1457_p0 = pnand %p1455_p13, %p1445_p12 }
  0x18   : > { %p1458_p3 = pneg %p1457_p0 }
  0x1a   : > { %p1465_p9 = pnand %p1464_p10, %p1458_p3 }
  0x1c   : > { %1468 = shalt.err (!%p1465_p9)
}
  0x1d   : > { %s1595_s8 = smov 128   ;;  %s1596_s9 = smov 8  }
  0x1e   : > { %1357 = dma.hbm_to_vmem [thread:$0]  (!%p1694_p11), %s1901_s1, 512, %s176_s28, [#allocation6], %s1595_s8, %s1595_s8, %s1596_s9  }
  0x1f   : > { %s1480_s12 = scalar_lea.vmem %s192_s6, 512  ;;  %p1488_p2 = scmp.lt.s32.totalorder %s192_s6, %s192_s6 }
  0x20   : > { %p1481_p1 = scmp.ne.s32.totalorder %s192_s6, %s1480_s12  ;;  %p1489_p6 = scmp.lt.s32.totalorder %s1480_s12, %s1480_s12 }
  0x22   : > { %p1483_p13 = pnand %p1481_p1, %p1445_p12  ;;  %p1490_p5 = por %p1489_p6, %p1488_p2 }
  0x24   : > { %p1484_p0 = pneg %p1483_p13 }
  0x26   : > { %p1491_p10 = pnand %p1490_p5, %p1484_p0 }
  0x28   : > { %1494 = shalt.err (!%p1491_p10)
}
  0x29   : > { %1360 = dma.hbm_to_vmem [thread:$0]  (!%p1694_p11), %s1903_s3, 512, %s192_s6, [#allocation6], %s1595_s8, %s1595_s8, %s1596_s9  }
  0x2a   : > { %s1717_s15 = sadd.s32 1, %s1591_s21   ;;  %s29_s16 = sadd.s32 1, %s1587_s20 }
  0x2b   : > { %s26_s17 = ssub.s32 %s1591_s21, %s1717_s15  ;;  %p36_p1 = scmp.ne.s32.totalorder %s1587_s20, %s1583_s19 }
  0x2c   : > { %p27_p2 = scmp.eq.s32.totalorder %s26_s17, 0  ;;  %p37_p6 = scmp.eq.s32.totalorder %s1591_s21, 0 }
  0x2d   : > { %p1914_p12 = scmp.eq.s32.totalorder %s1666_s22, 1  ;;  %p1371_p7 = scmp.lt.s32.totalorder %s1591_s21, 2 }
  0x2e   : > { %s1733_s27 = scalar_select %p27_p2, %s1587_s20, %s29_s16  }
  0x2f   : > { %p1727_p3 = por %p1914_p12, %p36_p1  ;;  %p38_p9 = por %p37_p6, %p36_p1 }
  0x30   : > { %s208_s28 = sand.u32 1, %s1587_s20   ;;  %s1228_s30 = sshll.u32 %s1591_s21, 7 }
  0x31   : > { %s1915_s23 = scalar_select %p1727_p3, 1, 0 }
  0x32   : > { %s1227_s29 = sshll.u32 %s208_s28, 3  ;;  %s1740_s8 = scalar_lea.hbm %s1900_s0, %s1228_s30 }
  0x33   : > { %s212_s9 = scalar_lea.vmem [#allocation2], %s1227_s29  ;;  %p1742_p11 = pnand %p1371_p7, %p38_p9 }
  0x34   : > { %s219_s10 = sshll.u32 %s212_s9, 4  ;;  %s209_s12 = scalar_lea.sflag [#allocation3], %s208_s28  ;;  %s220_s10 = int_to_ptr.vmem [resolvable:$true] %s219_s10 }
  0x35   : > { %s1495_s13 = scalar_lea.hbm %s1740_s8, 128  ;;  %p1497_p0 = pneg %p1742_p11 }
  0x36   : > { %p1496_p13 = scmp.ne.s32.totalorder %s1740_s8, %s1495_s13  ;;  %s1500_s17 = scalar_lea.hbm %s1900_s0, 256 }
  0x37   : > { %p1501_p1 = scmp.lt.s32.totalorder %s1740_s8, %s1900_s0  ;;  %p1502_p2 = scmp.lt.s32.totalorder %s1500_s17, %s1495_s13 }
  0x38   : > { %p1498_p5 = pnand %p1497_p0, %p1496_p13 }
  0x39   : > { %p1503_p6 = por %p1502_p2, %p1501_p1 }
  0x3a   : > { %p1499_p10 = pneg %p1498_p5 }
  0x3c   : > { %p1504_p12 = pnand %p1503_p6, %p1499_p10 }
  0x3e   : > { %1507 = shalt.err (!%p1504_p12)
}
  0x3f   : > { %s1508_s6 = scalar_lea.vmem %s220_s10, 128  ;;  %s1597_s28 = smov [#allocation2]  }
  0x40   : > { %p1509_p7 = scmp.ne.s32.totalorder %s220_s10, %s1508_s6  ;;  %s1513_s7 = sshll.u32 %s1597_s28, 4  ;;  %s1514_s7 = int_to_ptr.vmem [resolvable:$false] %s1513_s7 }
  0x41   : > { %s1515_s9 = scalar_lea.vmem %s1514_s7, 256  ;;  %p1516_p13 = scmp.lt.s32.totalorder %s220_s10, %s1514_s7 }
  0x42   : > { %p1511_p9 = pnand %p1509_p7, %p1497_p0  ;;  %p1517_p5 = scmp.lt.s32.totalorder %s1515_s9, %s1508_s6 }
  0x44   : > { %p1512_p3 = pneg %p1511_p9  ;;  %p1518_p4 = por %p1517_p5, %p1516_p13 }
  0x46   : > { %p1519_p8 = pnand %p1518_p4, %p1512_p3 }
  0x48   : > { %1522 = shalt.err (!%p1519_p8)
}
  0x49   : > { %1364 = dma.hbm_to_vmem [thread:$0]  (!%p1742_p11), %s1740_s8, 128, %s220_s10, %s209_s12  }
  0x4a   : > { %p1917_p10 = scmp.ne.s32.totalorder %s1912_s26, 0 }
  0x4b   : > { %s1763_s13 = sand.u32 (!%p1917_p10), 1, %s1583_s19   ;;  %p1918_p4 = scmp.ne.s32.totalorder (!%p1917_p10), %s1910_s24, 0 }
  0x4c   : > { %228 = sbr.rel (%p1917_p10) target bundleno = 1984 (0x7c0), region = 40  ;;  %s1230_s14 = sshll.u32 (!%p1917_p10), %s1763_s13, 3 }
  0x4d   : > { %s231_s16 = scalar_lea.sflag (!%p1917_p10), [#allocation3], %s1763_s13  ;;  %s234_s17 = scalar_lea.vmem (!%p1917_p10), [#allocation2], %s1230_s14 }
  0x51   : > { %1566 = dma.done.wait (%p1918_p4), %s231_s16, 128  }
  0x52   : > { %1568 = vsyncadd (%p1918_p4), %s231_s16, 4294967168  ;;  %p1919_p8 = scmp.eq.s32.totalorder %s1666_s22, 0 }
  0x54   : > { %1570 = dma.done.wait (%p1919_p8), [#allocation6], 1024   ;;  %p1920_p3 = pmov %p1919_p8 }
  0x55   : > { %v1598_v0 = vmov 0.0   ;;  %vm1599_vm0 = vmmov 0   ;;  %v273_v1 = vld [vmem:[#allocation5 + $0x18] sm:$0xff]  ;;  %v272_v2 = vld [vmem:[#allocation5 + $0x10] sm:$0xff]  ;;  %v271_v3 = vld [vmem:[#allocation5 + $0x8] sm:$0xff]  ;;  %vm281_vm1 = vcmask 261120  }
  0x56   : > { %1572 = vsyncadd (%p1920_p3), [#allocation6], 4294966272  ;;  %1280 = vmatprep.subr.mxu0 %v1598_v0  ;;  %1288 = vmatprep.mubr.msk.f32.mxu0 %vm1599_vm0, %v1598_v0  ;;  %v270_v4 = vld [vmem:[#allocation5] sm:$0xff]  ;;  %v269_v5 = vld [vmem:[%s234_s17] sm:$0xff]  ;;  %s1600_s8 = smov 64   ;;  %s1601_s10 = smov 96  }
  0x57   : > { %1291 = vmatprep.subr.mxu1 %v1598_v0  ;;  %1293 = vmatprep.mubr.msk.f32.mxu1 %vm1599_vm0, %v1598_v0  ;;  %v1234_v6 = vld [vmem:[%s1902_s2] ss:$0 sm:$0xff]  ;;  %s1602_s11 = smov 88   ;;  %s1603_s12 = smov 120   ;;  %vm359_vm2 = vcmask 64512   ;;  %vm1030_vm3 = vcmask 130048  }
  0x58   : > { %1281 = vmatpush3.msra.mxu0 %v273_v1  ;;  %s1604_s30 = smov 80   ;;  %s1605_s29 = smov 72   ;;  %vm1032_vm4 = vcmask 195584  }
  0x59   : > { %1282 = vmatprep.subr.mxu0 %v1598_v0  ;;  %s1606_s6 = smov 112   ;;  %s1607_s28 = smov 104  }
  0x5a   : > { %1283 = vmatpush3.msra.mxu0 %v272_v2  ;;  %s1608_s7 = smov 56   ;;  %s1609_s9 = smov 48  }
  0x5b   : > { %1284 = vmatprep.subr.mxu0 %v1598_v0  ;;  %s1610_s16 = smov 40   ;;  %s1611_s17 = smov 8  }
  0x5c   : > { %1285 = vmatpush3.msra.mxu0 %v271_v3  ;;  %s1612_s24 = smov 16   ;;  %s1613_s26 = smov 24  }
  0x5d   : > { %1286 = vmatprep.subr.mxu0 %v1598_v0  ;;  %p1921_p0 = scmp.ne.s32.totalorder %s1915_s23, 0 }
  0x5e   : > { %1287 = vmatpush3.msra.mxu0 %v270_v4 }
  0x5f   : > { %1289 = vmatmul.mubr.msk.f32.vlgmr.msra.gmra.mxu0 %vm281_vm1, %v269_v5  ;;  %1311 = vmatprep.subr.mxu0 %v1598_v0  ;;  %v1037_v5 = vld [vmem:[#allocation7 + $0x18] sm:$0xff] }
  0x60   : > { %1313 = vmatprep.mubr.msk.f32.mxu0 %vm1599_vm0, %v1598_v0 }
 0x11f   : > { %v351_v7 = vpop.f32.mrf.mxu0 }
 0x120   : > { %v1793_v8 = vadd.f32 %v1234_v6, %v351_v7  ;;  %v1036_v6 = vld [vmem:[#allocation7 + $0x10] sm:$0xff]  ;;  %v1035_v7 = vld [vmem:[#allocation7 + $0x8] sm:$0xff] }
 0x121   : > { %v1290_v9 = vpop.f32.mrf.mxu0 }
 0x122   : > { %446 = vrot.lane.b32.xlu1 %v1793_v8, %s1600_s8  ;;  %357 = vrot.lane.b32.xlu0 %v1793_v8, %s1601_s10  ;;  %v355_v10 = vmul.f32 0.35355338, %v1793_v8 }
 0x126   : > { %524 = vrot.lane.b32.xlu1 %v1793_v8, %s1602_s11  ;;  %s1251_s11 = sshll.u32 %s1666_s22, 7  ;;  %s1614_s22 = smov [#allocation8]  }
 0x12a   : > { %522 = vrot.lane.b32.xlu1 %v355_v10, %s1603_s12  ;;  %s268_s12 = scalar_lea.vmem [#allocation8], %s1230_s14  ;;  %s1527_s14 = sshll.u32 %s1614_s22, 4  ;;  %s1528_s14 = int_to_ptr.vmem [resolvable:$false] %s1527_s14 }
 0x12e   : > { %689 = vrot.lane.b32.xlu1 %v1793_v8, %s1604_s30  ;;  %s1133_s30 = sshll.u32 %s268_s12, 4  ;;  %s1134_s30 = int_to_ptr.vmem [resolvable:$true] %s1133_s30 }
 0x12f   : > { %p1530_p6 = scmp.lt.s32.totalorder %s1134_s30, %s1528_s14 }
 0x194   : > { %v447_v11 = vpop.permute.xlu1 %446  ;;  %v358_v12 = vpop.permute.xlu0 %357 }
 0x195   : > { %1292 = vmatpush3.xpose.msk.msra.mxu1 %vm359_vm2, %v358_v12 }
 0x196   : > { %1296 = vmatprep.subr.mxu1 %v1598_v0 }
 0x198   : > { %v525_v13 = vpop.permute.xlu1 %524  ;;  %1294 = vmatmul.mubr.msk.f32.vlgmr.msra.gmra.mxu1 %vm359_vm2, %v355_v10 }
 0x199   : > { %1297 = vmatpush3.msra.mxu1 %v447_v11  ;;  %1298 = vmatprep.mubr.msk.f32.mxu1 %vm1599_vm0, %v1598_v0 }
 0x19a   : > { %1301 = vmatprep.subr.mxu1 %v1598_v0 }
 0x19c   : > { %v523_v14 = vpop.permute.xlu1 %522 }
 0x1a0   : > { %v690_v15 = vpop.permute.xlu1 %689 }
 0x1a1   : > { %1312 = vmatpush3.xpose.msk.msra.mxu0 %vm359_vm2, %v690_v15 }
 0x1a2   : > { %1321 = vmatprep.subr.mxu0 %v1598_v0 }
 0x258   : > { %v431_v16 = vpop.f32.mrf.mxu1 }
 0x259   : > { %v435_v17 = vsel %vm359_vm2, %v431_v16, -inf }
 0x25a   : > { %436 = vmax.xlane.f32.xlu0 %v435_v17  ;;  %v1295_v18 = vpop.f32.mrf.mxu1 }
 0x270   : > { %854 = vrot.lane.b32.xlu0 %v1793_v8, %s1605_s29 }
 0x2e3   : > { %v437_v19 = vpop.xlane.xlu0 %436 }
 0x2e4   : > { %v438_v20 = vsub.f32 %v431_v16, %v437_v19 }
 0x2e6   : > { %v439_v21 = vmul.f32 1.442695, %v438_v20  ;;  %v1248_v20 = vld [vmem:[%s1904_s4] ss:$0 sm:$0xff] }
 0x2e7   : > { %v855_v26 = vpop.permute.xlu0 %854 }
 0x2e8   : > { %1427 = vpow2.f32 %v439_v21 }
 0x2f5   : > { %v1428_v22 = vpop.eup %1427 }
 0x2f6   : > { %v441_v23 = vsel %vm359_vm2, %v1428_v22, 0.0 }
 0x2f7   : > { %442 = vadd.xlane.f32.xlu1 %v441_v23 }
 0x308   : > { %687 = vrot.lane.b32.xlu1 %v355_v10, %s1606_s6 }
 0x30c   : > { %852 = vrot.lane.b32.xlu1 %v355_v10, %s1607_s28  ;;  %s1862_s28 = scalar_lea.hbm %s1905_s5, %s1251_s11 }
 0x380   : > { %v443_v24 = vpop.xlane.xlu1 %442 }
 0x381   : > { %1429 = vrcp.f32 %v443_v24 }
 0x384   : > { %v688_v25 = vpop.permute.xlu1 %687 }
 0x385   : > { %1314 = vmatmul.mubr.msk.f32.vlgmr.msra.gmra.mxu0 %vm359_vm2, %v688_v25 }
 0x386   : > { %1322 = vmatpush3.xpose.msk.msra.mxu0 %vm359_vm2, %v855_v26  ;;  %1323 = vmatprep.mubr.msk.f32.mxu0 %vm1599_vm0, %v1598_v0 }
 0x387   : > { %1331 = vmatprep.subr.mxu0 %v1598_v0 }
 0x388   : > { %v853_v27 = vpop.permute.xlu1 %852 }
 0x389   : > { %1324 = vmatmul.mubr.msk.f32.vlgmr.msra.gmra.mxu0 %vm359_vm2, %v853_v27 }
 0x38a   : > { %1339 = vmatprep.mubr.msk.f32.mxu0 %vm1599_vm0, %v1598_v0  ;;  %1332 = vmatpush3.msra.mxu0 %v1037_v5 }
 0x38b   : > { %1333 = vmatprep.subr.mxu0 %v1598_v0 }
 0x38c   : > { %1334 = vmatpush3.msra.mxu0 %v1036_v6 }
 0x38d   : > { %1335 = vmatprep.subr.mxu0 %v1598_v0 }
 0x38e   : > { %v1430_v28 = vpop.eup %1429  ;;  %1336 = vmatpush3.msra.mxu0 %v1035_v7 }
 0x38f   : > { %v445_v29 = vmul.f32 %v1430_v28, %v1428_v22  ;;  %1337 = vmatprep.subr.mxu0 %v1598_v0 }
 0x391   : > { %1299 = vmatmul.mubr.msk.f32.vlgmr.msra.gmra.mxu1 %vm359_vm2, %v445_v29 }
 0x392   : > { %1302 = vmatpush3.xpose.msk.msra.mxu1 %vm359_vm2, %v525_v13  ;;  %1303 = vmatprep.mubr.msk.f32.mxu1 %vm1599_vm0, %v1598_v0 }
 0x393   : > { %1306 = vmatprep.subr.mxu1 %v1598_v0 }
 0x395   : > { %1304 = vmatmul.mubr.msk.f32.vlgmr.msra.gmra.mxu1 %vm359_vm2, %v523_v14 }
 0x396   : > { %1308 = vmatprep.mubr.msk.f32.mxu1 %vm1599_vm0, %v1598_v0 }
 0x445   : > { %v761_v30 = vpop.f32.mrf.mxu0 }
 0x446   : > { %v765_v31 = vsel %vm359_vm2, %v761_v30, -inf }
 0x447   : > { %766 = vmax.xlane.f32.xlu0 %v765_v31  ;;  %v1315_v32 = vpop.f32.mrf.mxu0 }
 0x449   : > { %v926_v33 = vpop.f32.mrf.mxu0 }
 0x44a   : > { %v930_v40 = vsel %vm359_vm2, %v926_v33, -inf }
 0x44b   : > { %v1325_v34 = vpop.f32.mrf.mxu0 }
 0x451   : > { %v1828_v35 = vpop.f32.mrf.mxu1 }
 0x453   : > { %v1300_v36 = vpop.f32.mrf.mxu1 }
 0x455   : > { %v596_v37 = vpop.f32.mrf.mxu1 }
 0x456   : > { %v600_v38 = vsel %vm359_vm2, %v596_v37, -inf }
 0x457   : > { %601 = vmax.xlane.f32.xlu1 %v600_v38  ;;  %v1305_v39 = vpop.f32.mrf.mxu1 }
 0x45b   : > { %931 = vmax.xlane.f32.xlu1 %v930_v40 }
 0x4d0   : > { %v767_v41 = vpop.xlane.xlu0 %766 }
 0x4d1   : > { %v768_v42 = vsub.f32 %v761_v30, %v767_v41 }
 0x4d3   : > { %v769_v43 = vmul.f32 1.442695, %v768_v42 }
 0x4d5   : > { %1431 = vpow2.f32 %v769_v43 }
 0x4e0   : > { %v602_v44 = vpop.xlane.xlu1 %601 }
 0x4e1   : > { %v603_v52 = vsub.f32 %v596_v37, %v602_v44 }
 0x4e2   : > { %v1432_v45 = vpop.eup %1431 }
 0x4e3   : > { %v771_v46 = vsel %vm359_vm2, %v1432_v45, 0.0  ;;  %v604_v53 = vmul.f32 1.442695, %v603_v52 }
 0x4e4   : > { %772 = vadd.xlane.f32.xlu1 %v771_v46  ;;  %v932_v47 = vpop.xlane.xlu1 %931 }
 0x4e5   : > { %v933_v48 = vsub.f32 %v926_v33, %v932_v47 }
 0x4e7   : > { %v934_v49 = vmul.f32 1.442695, %v933_v48 }
 0x4e9   : > { %1433 = vpow2.f32 %v934_v49 }
 0x4ea   : > { %1435 = vpow2.f32 %v604_v53 }
 0x4f5   : > { %611 = vrot.lane.b32.xlu1 %v1793_v8, %s1608_s7  ;;  %s1120_s7 = scalar_lea.sflag [#allocation4], %s1763_s13 }
 0x4f6   : > { %v1434_v50 = vpop.eup %1433 }
 0x4f7   : > { %v936_v51 = vsel %vm359_vm2, %v1434_v50, 0.0  ;;  %v1436_v54 = vpop.eup %1435 }
 0x4f8   : > { %937 = vadd.xlane.f32.xlu0 %v936_v51  ;;  %v606_v55 = vsel %vm359_vm2, %v1436_v54, 0.0 }
 0x50e   : > { %776 = vrot.lane.b32.xlu0 %v1793_v8, %s1609_s9  ;;  %s1523_s9 = scalar_lea.vmem %s1134_s30, 128 }
 0x50f   : > { %p1524_p11 = scmp.ne.s32.totalorder %s1134_s30, %s1523_s9 }
 0x511   : > { %p1525_p1 = pnand %p1524_p11, %p1921_p0 }
 0x513   : > { %p1526_p2 = pneg %p1525_p1 }
 0x519   : > { %607 = vadd.xlane.f32.xlu1 %v606_v55 }
 0x52a   : > { %941 = vrot.lane.b32.xlu1 %v1793_v8, %s1610_s16  ;;  %v1034_v8 = vld [vmem:[#allocation7] sm:$0xff]  ;;  %s1529_s16 = scalar_lea.vmem %s1528_s14, 256 }
 0x52b   : > { %1338 = vmatpush3.msra.mxu0 %v1034_v8  ;;  %p1531_p12 = scmp.lt.s32.totalorder %s1529_s16, %s1523_s9 }
 0x52d   : > { %p1532_p7 = por %p1531_p12, %p1530_p6 }
 0x52f   : > { %p1533_p9 = pnand %p1532_p7, %p1526_p2 }
 0x56d   : > { %v773_v56 = vpop.xlane.xlu1 %772 }
 0x571   : > { %v612_v57 = vpop.permute.xlu1 %611 }
 0x572   : > { %1307 = vmatpush3.msra.mxu1 %v612_v57 }
 0x573   : > { %1316 = vmatprep.subr.mxu1 %v1598_v0 }
 0x581   : > { %v938_v59 = vpop.xlane.xlu0 %937 }
 0x585   : > { %v777_v63 = vpop.permute.xlu0 %776 }
 0x5a2   : > { %v608_v58 = vpop.xlane.xlu1 %607 }
 0x5a3   : > { %1437 = vrcp.f32 %v608_v58 }
 0x5a4   : > { %1439 = vrcp.f32 %v773_v56 }
 0x5a5   : > { %1441 = vrcp.f32 %v938_v59 }
 0x5a6   : > { %v942_v3 = vpop.permute.xlu1 %941 }
 0x5b0   : > { %v1438_v60 = vpop.eup %1437 }
 0x5b1   : > { %v610_v61 = vmul.f32 %v1438_v60, %v1436_v54  ;;  %v1440_v62 = vpop.eup %1439 }
 0x5b2   : > { %v775_v1 = vmul.f32 %v1440_v62, %v1432_v45  ;;  %v1442_v2 = vpop.eup %1441 }
 0x5b3   : > { %1309 = vmatmul.mubr.msk.f32.vlgmr.msra.gmra.mxu1 %vm359_vm2, %v610_v61  ;;  %v940_v4 = vmul.f32 %v1442_v2, %v1434_v50 }
 0x5b4   : > { %1317 = vmatpush3.msra.mxu1 %v777_v63  ;;  %1318 = vmatprep.mubr.msk.f32.mxu1 %vm1599_vm0, %v1598_v0 }
 0x5b5   : > { %1326 = vmatprep.subr.mxu1 %v1598_v0 }
 0x5b7   : > { %1319 = vmatmul.mubr.msk.f32.vlgmr.msra.gmra.mxu1 %vm359_vm2, %v775_v1 }
 0x5b8   : > { %1327 = vmatpush3.msra.mxu1 %v942_v3  ;;  %1328 = vmatprep.mubr.msk.f32.mxu1 %vm1599_vm0, %v1598_v0 }
 0x5bb   : > { %1329 = vmatmul.mubr.msk.f32.vlgmr.msra.gmra.mxu1 %vm359_vm2, %v940_v4 }
 0x673   : > { %v683_v9 = vpop.f32.mrf.mxu1 }
 0x674   : > { %1018 = vrot.lane.b32.xlu1 %v683_v9, %s1611_s17 }
 0x675   : > { %v1310_v10 = vpop.f32.mrf.mxu1 }
 0x677   : > { %v848_v11 = vpop.f32.mrf.mxu1 }
 0x678   : > { %1022 = vrot.lane.b32.xlu0 %v848_v11, %s1612_s24 }
 0x679   : > { %v1320_v12 = vpop.f32.mrf.mxu1 }
 0x67b   : > { %v1013_v13 = vpop.f32.mrf.mxu1 }
 0x67c   : > { %1026 = vrot.lane.b32.xlu1 %v1013_v13, %s1613_s26 }
 0x67d   : > { %v1330_v14 = vpop.f32.mrf.mxu1 }
 0x6e6   : > { %v1019_v15 = vpop.permute.xlu1 %1018 }
 0x6e7   : > { %v1029_v0 = vsel %vm359_vm2, %v1828_v35, %v1019_v15 }
 0x6ea   : > { %v1023_v16 = vpop.permute.xlu0 %1022 }
 0x6eb   : > { %v1031_v17 = vsel %vm1030_vm3, %v1029_v0, %v1023_v16 }
 0x6ee   : > { %v1027_v18 = vpop.permute.xlu1 %1026 }
 0x6ef   : > { %v1033_v19 = vsel %vm1032_vm4, %v1031_v17, %v1027_v18 }
 0x6f0   : > { %1340 = vmatmul.mubr.msk.f32.vlgmr.msra.gmra.mxu0 %vm281_vm1, %v1033_v19 }
 0x7b0   : > { %v1114_v21 = vpop.f32.mrf.mxu0 }
 0x7b1   : > { %v1115_v22 = vadd.f32 %v1248_v20, %v1114_v21 }
 0x7b2   : > { %v1341_v23 = vpop.f32.mrf.mxu0 }
 0x7b3   : > { %1118 = vst.msk [vmem:[%s268_s12] sm:$0xff] %vm281_vm1, %v1115_v22 }
 0x7b4   : > { %1536 = shalt.err (!%p1533_p9)
}
 0x7b5   : > { %s1537_s17 = scalar_lea.hbm %s1862_s28, 128  ;;  %s1541_s26 = scalar_lea.hbm %s1905_s5, 256 }
 0x7b6   : > { %p1538_p13 = scmp.ne.s32.totalorder %s1862_s28, %s1537_s17  ;;  %p1542_p4 = scmp.lt.s32.totalorder %s1862_s28, %s1905_s5 }
 0x7b7   : > { %p1543_p8 = scmp.lt.s32.totalorder %s1541_s26, %s1537_s17 }
 0x7b8   : > { %p1539_p5 = pnand %p1538_p13, %p1921_p0 }
 0x7b9   : > { %p1544_p3 = por %p1543_p8, %p1542_p4 }
 0x7ba   : > { %p1540_p10 = pneg %p1539_p5 }
 0x7bc   : > { %p1545_p11 = pnand %p1544_p3, %p1540_p10 }
 0x7be   : > { %1548 = shalt.err (!%p1545_p11)
}
 0x7bf   : > { %1352 = dma.vmem_to_hbm [thread:$0]  (%p1921_p0), %s1134_s30, 128, %s1862_s28, %s1120_s7  }
 0x7c0 PF: > { %s1145_s11 = sand.u32 1, %s1579_s18   ;;  %p1922_p1 = scmp.ne.s32.totalorder %s1911_s25, 0 }
 0x7c1   : > { %p1923_p2 = scmp.ge.s32.totalorder %s1591_s21, 2  ;;  %s1146_s12 = scalar_lea.sflag [#allocation4], %s1145_s11 }
 0x7c3   : > { %p1366_p6 = pnand %p1923_p2, %p1922_p1 }
 0x7c5   : > { %p1367_p12 = pneg %p1366_p6 }
 0x7c7   : > { %1574 = dma.done.wait (%p1367_p12), %s1146_s12, 128  }
 0x7c8   : > { %1576 = vsyncadd (%p1367_p12), %s1146_s12, 4294967168  ;;  %p19_p7 = scmp.ge.s32.totalorder %s1717_s15, 4   ;;  %s1924_s18 = smov %s1583_s19 }
 0x7c9   : > { %s1925_s19 = smov %s1587_s20  ;;  %s1926_s20 = smov %s1733_s27 }
 0x7ca   : > { %s1927_s21 = smov %s1717_s15  ;;  %21 = sbr.rel (!%p19_p7) target bundleno = 6 (0x6), region = 93 }
 0x7cf   :  { %1151 = vsyncpa [#allocation3], 1 }
 0x7d0   :  { %1153 = vsyncpa [#allocation3 + $0x1], 1 }
 0x7d1   :  { %1154 = vsyncpa [#allocation6], 1 }
 0x7d2   :  { %1155 = vsyncpa [#allocation4], 1 }
 0x7d3   :  { %1157 = vsyncpa [#allocation4 + $0x1], 1 }

</bundles_post_ra>
